<compile_context>
chip_gen: v7x
topology: tpu7x:2x2x1
jax: 0.10.0
libtpu: 0.0.40
codegen_flags: <defaults>
</compile_context>

<pallas_src>
import functools
import math

import jax
import jax.numpy as jnp
from jax.experimental import pallas as pl
from jax.experimental.pallas import tpu as pltpu


def _gelu_erf(x):
    # Exact erf-based gelu, matching the PyTorch reference.
    return x * 0.5 * (1.0 + jax.lax.erf(x / math.sqrt(2.0)))


# --------------------------------------------------------------------------
# Kernel 1: BertPredictionHeadTransform  (dense -> gelu -> LayerNorm)
# --------------------------------------------------------------------------
def _transform_kernel(x_ref, w1_ref, b1_ref, lnw_ref, lnb_ref, h_ref, *, eps):
    # Matmul in the stored operand dtype (bf16 feeds the MXU natively when
    # the weights are bf16); accumulate in f32.
    h = jnp.dot(x_ref[...], w1_ref[...], preferred_element_type=jnp.float32)
    h = h + b1_ref[...].astype(jnp.float32)                      # (tm, D)
    h = _gelu_erf(h)

    # BertLayerNorm (TF style: eps inside the sqrt), biased variance over D.
    u = jnp.mean(h, axis=-1, keepdims=True)
    d = h - u
    s = jnp.mean(d * d, axis=-1, keepdims=True)
    h = d * jax.lax.rsqrt(s + eps)
    h = lnw_ref[...].astype(jnp.float32) * h + lnb_ref[...].astype(jnp.float32)

    # Single cast to the decoder compute dtype; the decoder kernel then reads
    # it without any per-step casting.
    h_ref[...] = h.astype(h_ref.dtype)


# --------------------------------------------------------------------------
# Kernel 2: decoder matmul (bias-free Linear) + separate vocab bias
# --------------------------------------------------------------------------
def _decoder_kernel(h_ref, wd_ref, bd_ref, out_ref):
    acc = jnp.dot(h_ref[...], wd_ref[...], preferred_element_type=jnp.float32)
    acc = acc + bd_ref[...].astype(jnp.float32)
    out_ref[...] = acc.astype(out_ref.dtype)


# --------------------------------------------------------------------------
# Wrapper
# --------------------------------------------------------------------------
def bert_lm_prediction_head(hidden_states, params, *, eps=1e-12,
                            tm=512, tv=2048,
                            decoder_dtype=None, logits_dtype=None,
                            vmem_limit_bytes=48 * 1024 * 1024):
    """hidden_states: (N, L, D).  Returns logits (N, L, V)."""
    N, L, D = hidden_states.shape
    M = N * L
    x2d = hidden_states.reshape(M, D)

    wd = params["decoder_w"]          # (D, V)
    bd = params["out_bias"]           # (1, V)
    V = wd.shape[1]

    # Decoder compute dtype: follow the stored weight dtype unless overridden
    # (pass jnp.bfloat16 for f32 params to get native bf16 MXU throughput).
    if decoder_dtype is None:
        decoder_dtype = wd.dtype
    decoder_dtype = jnp.dtype(decoder_dtype)
    if wd.dtype != decoder_dtype:
        wd = wd.astype(decoder_dtype)
    h_dtype = decoder_dtype

    if logits_dtype is None:
        logits_dtype = hidden_states.dtype
    logits_dtype = jnp.dtype(logits_dtype)

    # Tile sizes.  If the full extent is smaller than the requested tile, use
    # the full extent (block dim == array dim is always layout-legal); the
    # defaults (512 / 2048) are multiples of 16 / 128 so large shapes get
    # unmasked, lane-dense stores with only the last block partially masked.
    tm = M if M < tm else tm
    tv = V if V < tv else tv
    n_i = pl.cdiv(M, tm)
    n_j = pl.cdiv(V, tv)

    x_item = jnp.dtype(x2d.dtype).itemsize
    w1_item = jnp.dtype(params["dense_w"].dtype).itemsize
    h_item = jnp.dtype(h_dtype).itemsize
    wd_item = jnp.dtype(wd.dtype).itemsize
    out_item = jnp.dtype(logits_dtype).itemsize

    # ---------------- transform: h = LN(gelu(x @ W1 + b1)) ----------------
    tfm = functools.partial(_transform_kernel, eps=eps)
    h = pl.pallas_call(
        tfm,
        out_shape=jax.ShapeDtypeStruct((M, D), h_dtype),
        grid_spec=pltpu.PrefetchScalarGridSpec(
            num_scalar_prefetch=0,
            grid=(n_i,),
            in_specs=[
                pl.BlockSpec((tm, D), lambda i: (i, 0)),   # x rows
                pl.BlockSpec((D, D), lambda i: (0, 0)),    # dense W (in, out)
                pl.BlockSpec((1, D), lambda i: (0, 0)),    # dense b
                pl.BlockSpec((1, D), lambda i: (0, 0)),    # LN weight
                pl.BlockSpec((1, D), lambda i: (0, 0)),    # LN bias
            ],
            out_specs=pl.BlockSpec((tm, D), lambda i: (i, 0)),
        ),
        compiler_params=pltpu.CompilerParams(
            dimension_semantics=("parallel",),
            vmem_limit_bytes=vmem_limit_bytes),
        cost_estimate=pl.CostEstimate(
            flops=2 * M * D * D,
            transcendentals=M * D,
            bytes_accessed=(M * D * (x_item + h_item)
                            + D * D * w1_item + 3 * D * w1_item)),
    )(x2d, params["dense_w"], params["dense_b"],
      params["ln_w"], params["ln_b"])

    # ---------------- decoder: logits = h @ Wd + bias ----------------
    # Vocab axis OUTER: the (D, tv) weight tile's block index is constant
    # across the inner row loop, so it stays resident in VMEM and is DMA'd
    # from HBM exactly once; only the small h rows are re-streamed per vocab
    # tile.  On v7x the leading "parallel" axis shards across the two cores,
    # so each core reads a disjoint half of the decoder weight columns.
    logits = pl.pallas_call(
        _decoder_kernel,
        out_shape=jax.ShapeDtypeStruct((M, V), logits_dtype),
        grid_spec=pltpu.PrefetchScalarGridSpec(
            num_scalar_prefetch=0,
            grid=(n_j, n_i),
            in_specs=[
                pl.BlockSpec((tm, D), lambda j, i: (i, 0)),   # h rows
                pl.BlockSpec((D, tv), lambda j, i: (0, j)),   # decoder W tile
                pl.BlockSpec((1, tv), lambda j, i: (0, j)),   # vocab bias tile
            ],
            out_specs=pl.BlockSpec((tm, tv), lambda j, i: (i, j)),
        ),
        compiler_params=pltpu.CompilerParams(
            # No carried state => both axes can megacore-shard.
            dimension_semantics=("parallel", "parallel"),
            vmem_limit_bytes=vmem_limit_bytes),
        cost_estimate=pl.CostEstimate(
            flops=2 * M * D * V,
            transcendentals=0,
            bytes_accessed=(D * V * wd_item          # weight streamed once
                            + n_j * M * D * h_item   # h re-read per vocab tile
                            + M * V * out_item       # logits writeback
                            + V * wd_item)),         # bias
    )(h, wd, bd)

    return logits.reshape(N, L, V)


# --------------------------------------------------------------------------
# Params / reference
# --------------------------------------------------------------------------
def init_params(key, hidden_size, vocab_size, dtype=jnp.float32):
    k1, k2 = jax.random.split(key, 2)
    return {
        # nn.Linear(hidden, hidden): stored transposed, i.e. (in, out)
        "dense_w": (0.02 * jax.random.normal(k1, (hidden_size, hidden_size))).astype(dtype),
        "dense_b": jnp.zeros((1, hidden_size), dtype),
        # BertLayerNorm
        "ln_w": jnp.ones((1, hidden_size), dtype),
        "ln_b": jnp.zeros((1, hidden_size), dtype),
        # nn.Linear(hidden, vocab, bias=False): stored as (in, out)
        "decoder_w": (0.02 * jax.random.normal(k2, (hidden_size, vocab_size))).astype(dtype),
        # separate vocab bias parameter
        "out_bias": jnp.zeros((1, vocab_size), dtype),
    }


def _reference(hidden_states, params, eps=1e-12):
    x = hidden_states.astype(jnp.float32)
    h = x @ params["dense_w"].astype(jnp.float32) + params["dense_b"][0].astype(jnp.float32)
    h = _gelu_erf(h)
    u = jnp.mean(h, axis=-1, keepdims=True)
    s = jnp.mean((h - u) ** 2, axis=-1, keepdims=True)
    h = (h - u) / jnp.sqrt(s + eps)
    h = params["ln_w"][0].astype(jnp.float32) * h + params["ln_b"][0].astype(jnp.float32)
    return h @ params["decoder_w"].astype(jnp.float32) + params["out_bias"][0].astype(jnp.float32)


if __name__ == "__main__":
    def check(name, out, ref, atol, rtol):
        assert out.shape == ref.shape, (name, out.shape, ref.shape)
        ok = jnp.allclose(out.astype(jnp.float32), ref, atol=atol, rtol=rtol)
        err = float(jnp.max(jnp.abs(out.astype(jnp.float32) - ref)))
        assert bool(ok), f"{name}: mismatch vs reference (max abs err {err})"

    key = jax.random.PRNGKey(0)
    kx, kp, kx2, kp2 = jax.random.split(key, 4)

    # Case 1: small shapes (not tile multiples), full f32, exact vs reference.
    N, L, D, V = 2, 9, 128, 500
    x = jax.random.normal(kx, (N, L, D), dtype=jnp.float32)
    params = init_params(kp, D, V)
    out = jax.block_until_ready(bert_lm_prediction_head(x, params))
    ref = _reference(x, params)
    check("f32", out, ref, 1e-4, 1e-4)

    # Case 2: f32 params with bf16 decoder operands (MXU-native) + bf16 logits.
    out_fast = jax.block_until_ready(
        bert_lm_prediction_head(x, params,
                                decoder_dtype=jnp.bfloat16,
                                logits_dtype=jnp.bfloat16))
    check("f32+bf16-decoder", out_fast, ref, 3e-2, 3e-2)

    # Case 3: all-bf16 params/activations (f32 accumulation inside kernels).
    x_bf = x.astype(jnp.bfloat16)
    params_bf = {k: v.astype(jnp.bfloat16) for k, v in params.items()}
    out_bf = jax.block_until_ready(bert_lm_prediction_head(x_bf, params_bf))
    ref_bf = _reference(x_bf, params_bf)
    check("bf16", out_bf, ref_bf, 3e-2, 3e-2)

    # Case 4: multi-tile grid with masked partial last blocks
    # (M = 530 > tm = 512, V = 2500 > tv = 2048; neither is a tile multiple).
    N2, L2, D2, V2 = 5, 106, 256, 2500
    x2 = jax.random.normal(kx2, (N2, L2, D2), dtype=jnp.float32)
    params2 = init_params(kp2, D2, V2)
    out2 = jax.block_until_ready(bert_lm_prediction_head(x2, params2))
    ref2 = _reference(x2, params2)
    check("f32-multitile", out2, ref2, 1e-3, 1e-3)

    print("KERNEL_OK")
</pallas_src>

<mosaic_0001>
module attributes {stable_mosaic.version = 11 : i64} {
  func.func @_transform_kernel(%arg0: i32, %arg1: memref<18x128xf32, #tpu.memory_space<vmem>>, %arg2: memref<128x128xf32, #tpu.memory_space<vmem>>, %arg3: memref<1x128xf32, #tpu.memory_space<vmem>>, %arg4: memref<1x128xf32, #tpu.memory_space<vmem>>, %arg5: memref<1x128xf32, #tpu.memory_space<vmem>>, %arg6: memref<18x128xf32, #tpu.memory_space<vmem>>) attributes {dimension_semantics = [#tpu.dimension_semantics<parallel>], iteration_bounds = array<i64: 1>, scalar_prefetch = 0 : i64, scratch_operands = 0 : i64, tpu.core_type = #tpu.core_type<tc>, window_params = [{transform_indices = @transform_0, window_bounds = array<i64: 18, 128>}, {pipeline_mode = #tpu.pipeline_mode<synchronous>, transform_indices = @transform_1, window_bounds = array<i64: 128, 128>}, {pipeline_mode = #tpu.pipeline_mode<synchronous>, transform_indices = @transform_2, window_bounds = array<i64: 1, 128>}, {pipeline_mode = #tpu.pipeline_mode<synchronous>, transform_indices = @transform_3, window_bounds = array<i64: 1, 128>}, {pipeline_mode = #tpu.pipeline_mode<synchronous>, transform_indices = @transform_4, window_bounds = array<i64: 1, 128>}, {transform_indices = @transform_5, window_bounds = array<i64: 18, 128>}]} {
    %c0 = arith.constant 0 : index
    %c0_0 = arith.constant 0 : index
    %0 = vector.load %arg1[%c0, %c0_0] : memref<18x128xf32, #tpu.memory_space<vmem>>, vector<18x128xf32>
    %c0_1 = arith.constant 0 : index
    %c0_2 = arith.constant 0 : index
    %1 = vector.load %arg2[%c0_1, %c0_2] : memref<128x128xf32, #tpu.memory_space<vmem>>, vector<128x128xf32>
    %cst = arith.constant dense<0.000000e+00> : vector<18x128xf32>
    %2 = tpu.matmul %0, %1, %cst {dimension_numbers = #tpu.dot_dimension_numbers<[1], [0], [0], [1], [0, 0, 1, 1], [], []>} : vector<18x128xf32>, vector<128x128xf32>, vector<18x128xf32> -> vector<18x128xf32>
    %c0_3 = arith.constant 0 : index
    %c0_4 = arith.constant 0 : index
    %3 = vector.load %arg3[%c0_3, %c0_4] : memref<1x128xf32, #tpu.memory_space<vmem>>, vector<1x128xf32>
    %4 = vector.broadcast %3 : vector<1x128xf32> to vector<18x128xf32>
    %5 = arith.addf %2, %4 : vector<18x128xf32>
    %cst_5 = arith.constant 5.000000e-01 : f32
    %6 = vector.broadcast %cst_5 : f32 to vector<18x128xf32>
    %7 = arith.mulf %5, %6 : vector<18x128xf32>
    %cst_6 = arith.constant 1.41421354 : f32
    %8 = vector.broadcast %cst_6 : f32 to vector<18x128xf32>
    %9 = arith.divf %5, %8 : vector<18x128xf32>
    %10 = math.erf %9 : vector<18x128xf32>
    %cst_7 = arith.constant 1.000000e+00 : f32
    %11 = vector.broadcast %cst_7 : f32 to vector<18x128xf32>
    %12 = arith.addf %11, %10 : vector<18x128xf32>
    %13 = arith.mulf %7, %12 : vector<18x128xf32>
    %cst_8 = arith.constant dense<0.000000e+00> : vector<18xf32>
    %14 = vector.multi_reduction <add>, %13, %cst_8 [1] : vector<18x128xf32> to vector<18xf32>
    %15 = vector.shape_cast %14 : vector<18xf32> to vector<18x1xf32>
    %cst_9 = arith.constant 1.280000e+02 : f32
    %16 = vector.broadcast %cst_9 : f32 to vector<18x1xf32>
    %17 = arith.divf %15, %16 : vector<18x1xf32>
    %18 = vector.broadcast %17 : vector<18x1xf32> to vector<18x128xf32>
    %19 = arith.subf %13, %18 : vector<18x128xf32>
    %20 = arith.mulf %19, %19 : vector<18x128xf32>
    %cst_10 = arith.constant dense<0.000000e+00> : vector<18xf32>
    %21 = vector.multi_reduction <add>, %20, %cst_10 [1] : vector<18x128xf32> to vector<18xf32>
    %22 = vector.shape_cast %21 : vector<18xf32> to vector<18x1xf32>
    %cst_11 = arith.constant 1.280000e+02 : f32
    %23 = vector.broadcast %cst_11 : f32 to vector<18x1xf32>
    %24 = arith.divf %22, %23 : vector<18x1xf32>
    %cst_12 = arith.constant 9.99999996E-13 : f32
    %25 = vector.broadcast %cst_12 : f32 to vector<18x1xf32>
    %26 = arith.addf %24, %25 : vector<18x1xf32>
    %27 = math.rsqrt %26 : vector<18x1xf32>
    %28 = vector.broadcast %27 : vector<18x1xf32> to vector<18x128xf32>
    %29 = arith.mulf %19, %28 : vector<18x128xf32>
    %c0_13 = arith.constant 0 : index
    %c0_14 = arith.constant 0 : index
    %30 = vector.load %arg4[%c0_13, %c0_14] : memref<1x128xf32, #tpu.memory_space<vmem>>, vector<1x128xf32>
    %31 = vector.broadcast %30 : vector<1x128xf32> to vector<18x128xf32>
    %32 = arith.mulf %31, %29 : vector<18x128xf32>
    %c0_15 = arith.constant 0 : index
    %c0_16 = arith.constant 0 : index
    %33 = vector.load %arg5[%c0_15, %c0_16] : memref<1x128xf32, #tpu.memory_space<vmem>>, vector<1x128xf32>
    %34 = vector.broadcast %33 : vector<1x128xf32> to vector<18x128xf32>
    %35 = arith.addf %32, %34 : vector<18x128xf32>
    %c0_17 = arith.constant 0 : index
    %c0_18 = arith.constant 0 : index
    %36 = vector.load %arg6[%c0_17, %c0_18] : memref<18x128xf32, #tpu.memory_space<vmem>>, vector<18x128xf32>
    tpu.vector_store %arg6[%c0_17, %c0_18], %35 {strides = array<i32>} : memref<18x128xf32, #tpu.memory_space<vmem>>, vector<18x128xf32>,
    return
  }
  func.func @transform_0(%arg0: i32) -> (i32, i32) {
    %c0_i32 = arith.constant 0 : i32
    %c0_i32_0 = arith.constant 0 : i32
    return %arg0, %c0_i32 : i32, i32
  }
  func.func @transform_1(%arg0: i32) -> (i32, i32) {
    %c0_i32 = arith.constant 0 : i32
    %c0_i32_0 = arith.constant 0 : i32
    %c0_i32_1 = arith.constant 0 : i32
    return %c0_i32, %c0_i32_0 : i32, i32
  }
  func.func @transform_2(%arg0: i32) -> (i32, i32) {
    %c0_i32 = arith.constant 0 : i32
    %c0_i32_0 = arith.constant 0 : i32
    %c0_i32_1 = arith.constant 0 : i32
    return %c0_i32, %c0_i32_0 : i32, i32
  }
  func.func @transform_3(%arg0: i32) -> (i32, i32) {
    %c0_i32 = arith.constant 0 : i32
    %c0_i32_0 = arith.constant 0 : i32
    %c0_i32_1 = arith.constant 0 : i32
    return %c0_i32, %c0_i32_0 : i32, i32
  }
  func.func @transform_4(%arg0: i32) -> (i32, i32) {
    %c0_i32 = arith.constant 0 : i32
    %c0_i32_0 = arith.constant 0 : i32
    %c0_i32_1 = arith.constant 0 : i32
    return %c0_i32, %c0_i32_0 : i32, i32
  }
  func.func @transform_5(%arg0: i32) -> (i32, i32) {
    %c0_i32 = arith.constant 0 : i32
    %c0_i32_0 = arith.constant 0 : i32
    return %arg0, %c0_i32 : i32, i32
  }
}

</mosaic_0001>

<bundles_post_ra>
// kernel: tpu_custom_call.1
= control target key start
LH: loop header
LB: loop body
LE: loop exit
PB: predicated region body
PF: predicated region fallthrough
CT: control target
= control target key end

     0   :  { %10 = vsyncpa [#allocation3], 0  ;;  %s541_s0 = inlined_call_operand.hbm [shape: f32[18,128], index: 0, kind: input, shape index: {}]   ;;  %s542_s1 = inlined_call_operand.hbm [shape: f32[128,128], index: 1, kind: input, shape index: {}]   ;;  %s543_s2 = inlined_call_operand.vmem [shape: f32[1,128], index: 2, kind: input, shape index: {}]   ;;  %s544_s3 = inlined_call_operand.vmem [shape: f32[1,128], index: 3, kind: input, shape index: {}]   ;;  %s545_s4 = inlined_call_operand.vmem [shape: f32[1,128], index: 4, kind: input, shape index: {}]   ;;  %s546_s5 = inlined_call_operand.hbm [shape: f32[18,128], index: 5, kind: output, shape index: {}]  }
   0x1   :  { %11 = vsyncpa [#allocation6], 0 }
   0x2   :  { %12 = vsyncpa [#allocation4], 0  ;;  %s444_s18 = smov [#allocation2]   ;;  %s372_s22 = scalar_lea.hbm %s541_s0, 384 }
   0x3   :  { %s18_s19 = sshll.u32 %s444_s18, 4  ;;  %p373_p0 = scmp.ne.s32.totalorder %s541_s0, %s372_s22  ;;  %s19_s19 = int_to_ptr.vmem [resolvable:$true] %s18_s19 }
   0x4   :  { %p376_p1 = scmp.lt.u32.totalorder %s372_s22, %s541_s0 }
   0x6   :  { %p378_p2 = pnand %p376_p1, %p373_p0 }
   0x8   :  { %381 = shalt.err (!%p378_p2)
}
   0x9   :  { %s382_s27 = scalar_lea.vmem %s19_s19, 384  ;;  %p387_p4 = scmp.lt.s32.totalorder %s19_s19, %s19_s19 }
   0xa   :  { %p383_p3 = scmp.ne.s32.totalorder %s19_s19, %s382_s27  ;;  %p388_p5 = scmp.lt.s32.totalorder %s382_s27, %s382_s27 }
   0xc   :  { %p389_p6 = por %p388_p5, %p387_p4 }
   0xe   :  { %p390_p7 = pnand %p389_p6, %p383_p3 }
  0x10   :  { %393 = shalt.err (!%p390_p7)
}
  0x11   :  { %s445_s28 = smov 128   ;;  %s446_s29 = smov 8  }
  0x12   :  { %24 = dma.hbm_to_vmem [thread:$0]  %s541_s0, 384, %s19_s19, [#allocation3], %s445_s28, %s445_s28, %s446_s29  }
  0x13   :  { %s447_s7 = smov [#allocation5]   ;;  %s394_s11 = scalar_lea.hbm %s542_s1, 2048 }
  0x14   :  { %s30_s8 = sshll.u32 %s447_s7, 4  ;;  %p395_p8 = scmp.ne.s32.totalorder %s542_s1, %s394_s11  ;;  %s31_s8 = int_to_ptr.vmem [resolvable:$true] %s30_s8 }
  0x15   :  { %p398_p9 = scmp.lt.u32.totalorder %s394_s11, %s542_s1 }
  0x17   :  { %p400_p10 = pnand %p398_p9, %p395_p8 }
  0x19   :  { %403 = shalt.err (!%p400_p10)
}
  0x1a   :  { %s404_s16 = scalar_lea.vmem %s31_s8, 2048  ;;  %p409_p12 = scmp.lt.s32.totalorder %s31_s8, %s31_s8 }
  0x1b   :  { %p405_p11 = scmp.ne.s32.totalorder %s31_s8, %s404_s16  ;;  %p410_p13 = scmp.lt.s32.totalorder %s404_s16, %s404_s16 }
  0x1d   :  { %p411_p0 = por %p410_p13, %p409_p12 }
  0x1f   :  { %p412_p1 = pnand %p411_p0, %p405_p11 }
  0x21   :  { %415 = shalt.err (!%p412_p1)
}
  0x22   :  { %36 = dma.hbm_to_vmem [thread:$0]  %s542_s1, 2048, %s31_s8, [#allocation6], %s445_s28, %s445_s28, %s446_s29  }
  0x23   :  { %438 = dma.done.wait [#allocation3], 384  }
  0x24   :  { %439 = vsyncadd [#allocation3], 4294966912 }
  0x25   :  { %440 = dma.done.wait [#allocation6], 2048  }
  0x26   :  { %441 = vsyncadd [#allocation6], 4294965248  ;;  %v448_v0 = vmov 0.0|0.0   ;;  %vm449_vm0 = vmmov 0   ;;  %v450_v1 = vmov 0.0   ;;  %v52_v2 = vld [vmem:[#allocation5] sm:$0xff] }
  0x27   :  { %312 = vmatprep.subr.bf16.mxu0 %v448_v0  ;;  %336 = vmatprep.subr.bf16.mxu1 %v448_v0  ;;  %v53_v3 = vld [vmem:[#allocation5 + $0x8] sm:$0xff]  ;;  %v54_v4 = vld [vmem:[#allocation5 + $0x10] sm:$0xff]  ;;  %v55_v6 = vld [vmem:[#allocation5 + $0x18] sm:$0xff]  ;;  %vm175_vm1 = vcmask 1041408   ;;  %s451_s22 = smov [#allocation7]  }
  0x28   :  { %303 = vmatprep.mubr.msk.f32.mxu0 %vm449_vm0, %v450_v1  ;;  %306 = vmatprep.mubr.msk.f32.mxu1 %vm449_vm0, %v450_v1  ;;  %v313_v5 = vpack.c.bf16 %v53_v3, %v52_v2  ;;  %v316_v7 = vpack.c.bf16 %v55_v6, %v54_v4  ;;  %v56_v8 = vld [vmem:[#allocation5 + $0x20] sm:$0xff]  ;;  %v57_v9 = vld [vmem:[#allocation5 + $0x28] sm:$0xff]  ;;  %v58_v11 = vld [vmem:[#allocation5 + $0x30] sm:$0xff]  ;;  %s236_s23 = sshll.u32 %s451_s22, 4  ;;  %s237_s23 = int_to_ptr.vmem [resolvable:$true] %s236_s23 }
  0x29   :  { %v319_v10 = vpack.c.bf16 %v57_v9, %v56_v8  ;;  %v59_v12 = vld [vmem:[#allocation5 + $0x38] sm:$0xff]  ;;  %v60_v14 = vld [vmem:[#allocation5 + $0x40] sm:$0xff]  ;;  %v61_v15 = vld [vmem:[#allocation5 + $0x48] sm:$0xff]  ;;  %p421_p3 = scmp.lt.s32.totalorder %s237_s23, %s237_s23 }
  0x2a   :  { %314 = vmatpush3.bf16.msra.mxu0 %v313_v5  ;;  %344 = vmatpush3.bf16.msra.mxu1 %v313_v5  ;;  %v322_v13 = vpack.c.bf16 %v59_v12, %v58_v11  ;;  %v325_v16 = vpack.c.bf16 %v61_v15, %v60_v14  ;;  %v62_v17 = vld [vmem:[#allocation5 + $0x50] sm:$0xff]  ;;  %v63_v18 = vld [vmem:[#allocation5 + $0x58] sm:$0xff]  ;;  %v64_v20 = vld [vmem:[#allocation5 + $0x60] sm:$0xff] }
  0x2b   :  { %315 = vmatprep.subr.bf16.mxu0 %v448_v0  ;;  %337 = vmatprep.subr.bf16.mxu1 %v448_v0  ;;  %v328_v19 = vpack.c.bf16 %v63_v18, %v62_v17  ;;  %v65_v21 = vld [vmem:[#allocation5 + $0x68] sm:$0xff]  ;;  %v66_v23 = vld [vmem:[#allocation5 + $0x70] sm:$0xff]  ;;  %v67_v24 = vld [vmem:[#allocation5 + $0x78] sm:$0xff] }
  0x2c   :  { %v331_v22 = vpack.c.bf16 %v65_v21, %v64_v20  ;;  %v334_v25 = vpack.c.bf16 %v67_v24, %v66_v23  ;;  %v49_v26 = vld [vmem:[#allocation2] sm:$0xff]  ;;  %v50_v27 = vld [vmem:[#allocation2 + $0x8] sm:$0xff]  ;;  %v51_v28 = vld [vmem:[#allocation2 + $0x10] sm:$0x3] }
  0x2d   :  { %v249_v29 = vld [vmem:[%s543_s2] ss:$0 sm:$0xff] }
  0x2e   :  { %317 = vmatpush3.bf16.msra.mxu0 %v316_v7  ;;  %345 = vmatpush3.bf16.msra.mxu1 %v316_v7  ;;  %v250_v14 = vld [vmem:[%s544_s3] ss:$0 sm:$0xff]  ;;  %s416_s3 = scalar_lea.vmem %s237_s23, 384 }
  0x2f   :  { %318 = vmatprep.subr.bf16.mxu0 %v448_v0  ;;  %338 = vmatprep.subr.bf16.mxu1 %v448_v0  ;;  %p417_p2 = scmp.ne.s32.totalorder %s237_s23, %s416_s3  ;;  %p422_p4 = scmp.lt.s32.totalorder %s416_s3, %s416_s3 }
  0x31   :  { %p423_p5 = por %p422_p4, %p421_p3 }
  0x32   :  { %320 = vmatpush3.bf16.msra.mxu0 %v319_v10  ;;  %346 = vmatpush3.bf16.msra.mxu1 %v319_v10 }
  0x33   :  { %321 = vmatprep.subr.bf16.mxu0 %v448_v0  ;;  %339 = vmatprep.subr.bf16.mxu1 %v448_v0  ;;  %p424_p6 = pnand %p423_p5, %p417_p2 }
  0x36   :  { %323 = vmatpush3.bf16.msra.mxu0 %v322_v13  ;;  %347 = vmatpush3.bf16.msra.mxu1 %v322_v13 }
  0x37   :  { %324 = vmatprep.subr.bf16.mxu0 %v448_v0  ;;  %340 = vmatprep.subr.bf16.mxu1 %v448_v0 }
  0x3a   :  { %326 = vmatpush3.bf16.msra.mxu0 %v325_v16  ;;  %348 = vmatpush3.bf16.msra.mxu1 %v325_v16  ;;  %v251_v16 = vld [vmem:[%s545_s4] ss:$0 sm:$0xff] }
  0x3b   :  { %327 = vmatprep.subr.bf16.mxu0 %v448_v0  ;;  %341 = vmatprep.subr.bf16.mxu1 %v448_v0 }
  0x3e   :  { %329 = vmatpush3.bf16.msra.mxu0 %v328_v19  ;;  %349 = vmatpush3.bf16.msra.mxu1 %v328_v19 }
  0x3f   :  { %330 = vmatprep.subr.bf16.mxu0 %v448_v0  ;;  %342 = vmatprep.subr.bf16.mxu1 %v448_v0 }
  0x42   :  { %332 = vmatpush3.bf16.msra.mxu0 %v331_v22  ;;  %350 = vmatpush3.bf16.msra.mxu1 %v331_v22 }
  0x43   :  { %333 = vmatprep.subr.bf16.mxu0 %v448_v0  ;;  %343 = vmatprep.subr.bf16.mxu1 %v448_v0 }
  0x46   :  { %335 = vmatpush3.bf16.msra.mxu0 %v334_v25  ;;  %351 = vmatpush3.bf16.msra.mxu1 %v334_v25 }
  0x49   :  { %304 = vmatmul.mubr.f32.vlgmr.msra.gmra.mrb[0].mxu0 %v49_v26  ;;  %307 = vmatmul.mubr.f32.vlgmr.msra.gmra.mrb[0].mxu1 %v50_v27 }
  0x4a   :  { %309 = vmatprep.mubr.msk.f32.mxu1 %vm449_vm0, %v450_v1 }
  0x4d   :  { %310 = vmatmul.mubr.f32.gmra.mrb[2].mxu1 %v51_v28 }
 0x11c   :  { %v141_v30 = vpop.f32.mrb[0].mxu0  ;;  %v146_v31 = vpop.f32.mrb[0].mxu1 }
 0x11d   :  { %v147_v32 = vadd.f32 %v249_v29, %v146_v31  ;;  %v308_v33 = vpop.f32.mrb[1].mxu1  ;;  %v305_v34 = vpop.f32.mrb[1].mxu0  ;;  %v142_v35 = vadd.f32 %v249_v29, %v141_v30 }
 0x11f   :  { %v160_v36 = vmul.f32 0.70710677, %v147_v32  ;;  %v159_v40 = vmul.f32 0.70710677, %v142_v35  ;;  %v156_v43 = vmul.f32 0.5, %v147_v32  ;;  %v155_v53 = vmul.f32 0.5, %v142_v35 }
 0x120   :  { %v151_v37 = vpop.f32.mrb[2].mxu1 }
 0x121   :  { %v152_v38 = vadd.f32 %v249_v29, %v151_v37  ;;  %v311_v39 = vpop.f32.mrb[3].mxu1  ;;  %360 = verf.f32 %v160_v36 }
 0x123   :  { %v161_v41 = vmul.f32 0.70710677, %v152_v38  ;;  %v157_v48 = vmul.f32 0.5, %v152_v38 }
 0x125   :  { %362 = verf.f32 %v161_v41 }
 0x126   :  { %364 = verf.f32 %v159_v40 }
 0x12b   :  { %v361_v42 = vpop.eup %360 }
 0x12c   :  { %v166_v44 = vadd.f32 1.0, %v361_v42 }
 0x12e   :  { %v169_v46 = vmul.f32 %v166_v44, %v156_v43 }
 0x12f   :  { %v363_v45 = vpop.eup %362 }
 0x130   :  { %v365_v47 = vpop.eup %364  ;;  %v167_v49 = vadd.f32 1.0, %v363_v45  ;;  %173 = vadd.xlane.f32.xlu1 %v169_v46 }
 0x131   :  { %v165_v51 = vadd.f32 1.0, %v365_v47 }
 0x132   :  { %v170_v50 = vmul.f32 %v167_v49, %v157_v48 }
 0x133   :  { %v168_v54 = vmul.f32 %v165_v51, %v155_v53 }
 0x134   :  { %v176_v52 = vsel %vm175_vm1, %v170_v50, 0.0 }
 0x135   :  { %177 = vadd.xlane.f32.xlu0 %v176_v52 }
 0x139   :  { %171 = vadd.xlane.f32.xlu0 %v168_v54 }
 0x1bd   :  { %v174_v55 = vpop.xlane.xlu1 %173 }
 0x1be   :  { %v181_v56 = vmul.f32 0.0078125, %v174_v55 }
 0x1c0   :  { %v184_v57 = vsub.f32 %v169_v46, %v181_v56 }
 0x1c2   :  { %v178_v58 = vpop.xlane.xlu0 %177  ;;  %v187_v59 = vmul.f32 %v184_v57, %v184_v57 }
 0x1c3   :  { %v182_v60 = vmul.f32 0.0078125, %v178_v58 }
 0x1c4   :  { %191 = vadd.xlane.f32.xlu0 %v187_v59 }
 0x1c5   :  { %v185_v63 = vsub.f32 %v170_v50, %v182_v60 }
 0x1c6   :  { %v172_v61 = vpop.xlane.xlu0 %171 }
 0x1c7   :  { %v180_v62 = vmul.f32 0.0078125, %v172_v61  ;;  %v188_v2 = vmul.f32 %v185_v63, %v185_v63 }
 0x1c9   :  { %v183_v0 = vsub.f32 %v168_v54, %v180_v62  ;;  %v193_v3 = vsel %vm175_vm1, %v188_v2, 0.0 }
 0x1cb   :  { %v186_v1 = vmul.f32 %v183_v0, %v183_v0 }
 0x1cd   :  { %189 = vadd.xlane.f32.xlu1 %v186_v1 }
 0x1d1   :  { %194 = vadd.xlane.f32.xlu1 %v193_v3 }
 0x251   :  { %v192_v4 = vpop.xlane.xlu0 %191 }
 0x252   :  { %v197_v5 = vmul.f32 0.0078125, %v192_v4 }
 0x254   :  { %v200_v6 = vadd.f32 1e-12, %v197_v5 }
 0x256   :  { %366 = vrsqrt.f32 %v200_v6 }
 0x25a   :  { %v190_v7 = vpop.xlane.xlu1 %189 }
 0x25b   :  { %v196_v8 = vmul.f32 0.0078125, %v190_v7 }
 0x25d   :  { %v199_v9 = vadd.f32 1e-12, %v196_v8 }
 0x25e   :  { %v195_v10 = vpop.xlane.xlu1 %194 }
 0x25f   :  { %368 = vrsqrt.f32 %v199_v9  ;;  %v198_v11 = vmul.f32 0.0078125, %v195_v10 }
 0x260   :  { %v367_v12 = vpop.eup %366 }
 0x261   :  { %v201_v13 = vadd.f32 1e-12, %v198_v11  ;;  %v206_v15 = vmul.f32 %v367_v12, %v184_v57 }
 0x263   :  { %370 = vrsqrt.f32 %v201_v13  ;;  %v216_v17 = vmul.f32 %v250_v14, %v206_v15 }
 0x265   :  { %v226_v18 = vadd.f32 %v251_v16, %v216_v17 }
 0x267   :  { %229 = vst [vmem:[#allocation7 + $0x8] sm:$0xff] %v226_v18 }
 0x269   :  { %v369_v19 = vpop.eup %368 }
 0x26a   :  { %v205_v20 = vmul.f32 %v369_v19, %v183_v0 }
 0x26c   :  { %v215_v21 = vmul.f32 %v250_v14, %v205_v20 }
 0x26d   :  { %v371_v22 = vpop.eup %370 }
 0x26e   :  { %v207_v23 = vmul.f32 %v371_v22, %v185_v63  ;;  %v225_v24 = vadd.f32 %v251_v16, %v215_v21 }
 0x270   :  { %v217_v25 = vmul.f32 %v250_v14, %v207_v23  ;;  %228 = vst [vmem:[#allocation7] sm:$0xff] %v225_v24 }
 0x272   :  { %v227_v26 = vadd.f32 %v251_v16, %v217_v25 }
 0x274   :  { %230 = vst [vmem:[#allocation7 + $0x10] sm:$0x3] %v227_v26 }
 0x275   :  { %427 = shalt.err (!%p424_p6)
}
 0x276   :  { %s428_s25 = scalar_lea.hbm %s546_s5, 384 }
 0x277   :  { %p429_p7 = scmp.ne.s32.totalorder %s546_s5, %s428_s25  ;;  %p432_p8 = scmp.lt.u32.totalorder %s428_s25, %s546_s5 }
 0x279   :  { %p434_p9 = pnand %p432_p8, %p429_p7 }
 0x27b   :  { %437 = shalt.err (!%p434_p9)
}
 0x27c   :  { %242 = dma.vmem_to_hbm [thread:$0]  %s237_s23, 384, %s546_s5, [#allocation4], %s445_s28, %s445_s28, %s446_s29  }
 0x27d   :  { %442 = dma.done.wait [#allocation4], 384  }
 0x27e   :  { %443 = vsyncadd [#allocation4], 4294966912 }
 0x27f   :  { %246 = vsyncpa [#allocation3], 1 }
 0x280   :  { %247 = vsyncpa [#allocation6], 1 }
 0x281   :  { %248 = vsyncpa [#allocation4], 1 }

</bundles_post_ra>
